<compile_context>
chip_gen: v5e
topology: v5e:2x2
jax: 0.10.0
libtpu: 0.0.40
codegen_flags: <defaults>
</compile_context>

<pallas_src>
import functools

import jax
import jax.numpy as jnp
from jax import lax
from jax.experimental import pallas as pl
from jax.experimental.pallas import tpu as pltpu


def _round_up(a: int, m: int) -> int:
    return (a + m - 1) // m * m


def conv_layer_kernel(x_ref, dwp_ref, wp_ref, bp_ref, o_ref, *, seq_len):
    # x_ref: (R, D) rows = flattened (batch, seq); lanes = channels (unpadded).
    x = x_ref[...]                                      # (R, D) f32
    r_rows, d = x.shape
    inv_d = 1.0 / d
    eps = 1e-6

    # ---- LayerNorm over the feature dim (gamma=1, beta=0) ----
    mean = jnp.sum(x, axis=-1, keepdims=True) * inv_d
    xc = x - mean
    var = jnp.sum(xc * xc, axis=-1, keepdims=True) * inv_d
    y = xc * lax.rsqrt(var + eps)                       # (R, D)

    # ---- depthwise 3-tap conv along the sequence axis (zero padding) ----
    # Tiles hold whole sequences (each tile starts at a sequence boundary),
    # so the roll only wraps at rows whose in-sequence-position mask zeroes
    # the shifted-in neighbor anyway.
    dwp = dwp_ref[...]                                  # (4, D): [w_prev, w_cur, w_next, bias]
    pos = lax.broadcasted_iota(jnp.int32, (r_rows, 1), 0) % seq_len
    y_prev = jnp.where(pos == 0, 0.0, pltpu.roll(y, shift=1, axis=0))            # y[t-1]
    y_next = jnp.where(pos == seq_len - 1, 0.0,
                       pltpu.roll(y, shift=r_rows - 1, axis=0))                  # y[t+1]
    dw = y_prev * dwp[0:1] + y * dwp[1:2] + y_next * dwp[2:3] + dwp[3:4]         # (R, D)

    # ---- pointwise (1x1) conv == channel-mixing matmul on the MXU ----
    out = jnp.dot(dw, wp_ref[...], preferred_element_type=jnp.float32) + bp_ref[...]
    o_ref[...] = out.astype(o_ref.dtype)                # (R, O) store


def conv_layer(x, wd, bd, wp, bp, *, max_tile_rows=2048):
    """x: (B, S, D); wd: (3, D); bd: (1, D); wp: (D, O); bp: (1, O) -> (B, S, O)."""
    B, S, D = x.shape
    O = wp.shape[1]

    # ---- choose sequences-per-tile ----
    # Whole sequences per tile so the 3-tap conv never crosses a tile boundary
    # (no halo needed).  Keep at least two tiles when batch >= 2 so the
    # "parallel" grid axis shards across both v7x TensorCores, and keep the
    # row tile sublane-aligned (multiple of 8) unless it covers the whole array.
    # TODO(synk): for single sequences longer than max_tile_rows add seq-axis
    #             tiling with a 1-row halo carried in VMEM scratch.
    spt = max(1, min(B, max_tile_rows // max(S, 1)))    # sequences per tile
    if B >= 2:
        spt = min(spt, (B + 1) // 2)                    # guarantee >= 2 row tiles
    if spt < B:
        while (spt * S) % 8 != 0 and spt < B:           # sublane-align the tile
            spt += 1
        if (spt * S) % 8 != 0:
            spt = B                                     # fall back to one full tile
    tile_r = spt * S
    Bp = _round_up(B, spt)
    num_tiles = Bp // spt

    dt = x.dtype
    if Bp > B:
        x = jnp.pad(x, ((0, Bp - B), (0, 0), (0, 0)))
    xf = x.reshape(Bp * S, D)

    # Pack the depthwise taps + depthwise bias into one (4, D) parameter array.
    dwp = jnp.concatenate([wd, bd], axis=0)             # (4, D)

    full = lambda i: (0, 0)
    out_flat = pl.pallas_call(
        functools.partial(conv_layer_kernel, seq_len=S),
        out_shape=jax.ShapeDtypeStruct((Bp * S, O), dt),
        grid=(num_tiles,),
        in_specs=[
            pl.BlockSpec((tile_r, D), lambda i: (i, 0)),   # x rows (lanes = D, unpadded)
            pl.BlockSpec((4, D), full),                    # depthwise taps + bias
            pl.BlockSpec((D, O), full),                    # pointwise weight
            pl.BlockSpec((1, O), full),                    # pointwise bias
        ],
        out_specs=pl.BlockSpec((tile_r, O), lambda i: (i, 0)),
        compiler_params=pltpu.CompilerParams(
            dimension_semantics=("parallel",),
            vmem_limit_bytes=32 * 1024 * 1024),
    )(xf, dwp, wp, bp)

    if Bp > B:
        out_flat = out_flat[:B * S]
    return out_flat.reshape(B, S, O)


def reference(x, wd, bd, wp, bp):
    # pure-JAX reference of the same forward pass (f32, high-precision dot)
    mean = x.mean(-1, keepdims=True)
    var = ((x - mean) ** 2).mean(-1, keepdims=True)
    y = (x - mean) / jnp.sqrt(var + 1e-6)
    y_prev = jnp.pad(y, ((0, 0), (1, 0), (0, 0)))[:, :-1, :]
    y_next = jnp.pad(y, ((0, 0), (0, 1), (0, 0)))[:, 1:, :]
    dw = y_prev * wd[0] + y * wd[1] + y_next * wd[2] + bd[0]
    return jnp.einsum("bsd,do->bso", dw, wp,
                      precision=lax.Precision.HIGHEST) + bp[0]


if __name__ == "__main__":
    B, S, D, O = 2, 8, 32, 16   # batch, seq_len, in_channels, out_channels

    key = jax.random.PRNGKey(0)
    kx, kwd, kbd, kwp, kbp = jax.random.split(key, 5)

    x = jax.random.normal(kx, (B, S, D), dtype=jnp.float32)

    # depthwise weight: torch shape (D,1,3,1), kaiming_normal (fan_in=3) -> std=sqrt(2/3)
    wd = jax.random.normal(kwd, (3, D), dtype=jnp.float32) * jnp.sqrt(2.0 / 3.0)
    # depthwise bias: default Conv2d init U(-1/sqrt(3), 1/sqrt(3))
    bd = jax.random.uniform(kbd, (1, D), dtype=jnp.float32,
                            minval=-1.0 / jnp.sqrt(3.0), maxval=1.0 / jnp.sqrt(3.0))
    # pointwise weight: torch shape (O,D,1,1), kaiming_normal (fan_in=D) -> std=sqrt(2/D)
    wp = jax.random.normal(kwp, (D, O), dtype=jnp.float32) * jnp.sqrt(2.0 / D)
    # pointwise bias: default Conv2d init U(-1/sqrt(D), 1/sqrt(D))
    bp = jax.random.uniform(kbp, (1, O), dtype=jnp.float32,
                            minval=-1.0 / jnp.sqrt(D), maxval=1.0 / jnp.sqrt(D))

    out = jax.block_until_ready(conv_layer(x, wd, bd, wp, bp))
    ref = reference(x, wd, bd, wp, bp)

    assert out.shape == (B, S, O), out.shape
    max_err = float(jnp.max(jnp.abs(out - ref)))
    assert max_err < 1e-3, f"mismatch vs JAX reference: max_abs_err={max_err}"

    print("KERNEL_OK")
</pallas_src>

<mosaic_0001>
module attributes {stable_mosaic.version = 11 : i64} {
  func.func @conv_layer_kernel(%arg0: i32, %arg1: memref<8x32xf32, #tpu.memory_space<vmem>>, %arg2: memref<4x32xf32, #tpu.memory_space<vmem>>, %arg3: memref<32x16xf32, #tpu.memory_space<vmem>>, %arg4: memref<1x16xf32, #tpu.memory_space<vmem>>, %arg5: memref<8x16xf32, #tpu.memory_space<vmem>>) attributes {dimension_semantics = [#tpu.dimension_semantics<parallel>], iteration_bounds = array<i64: 2>, scalar_prefetch = 0 : i64, scratch_operands = 0 : i64, tpu.core_type = #tpu.core_type<tc>, window_params = [{transform_indices = @transform_0, window_bounds = array<i64: 8, 32>}, {pipeline_mode = #tpu.pipeline_mode<synchronous>, transform_indices = @transform_1, window_bounds = array<i64: 4, 32>}, {pipeline_mode = #tpu.pipeline_mode<synchronous>, transform_indices = @transform_2, window_bounds = array<i64: 32, 16>}, {pipeline_mode = #tpu.pipeline_mode<synchronous>, transform_indices = @transform_3, window_bounds = array<i64: 1, 16>}, {transform_indices = @transform_4, window_bounds = array<i64: 8, 16>}]} {
    %c0 = arith.constant 0 : index
    %c0_0 = arith.constant 0 : index
    %0 = vector.load %arg1[%c0, %c0_0] : memref<8x32xf32, #tpu.memory_space<vmem>>, vector<8x32xf32>
    %cst = arith.constant dense<0.000000e+00> : vector<8xf32>
    %1 = vector.multi_reduction <add>, %0, %cst [1] : vector<8x32xf32> to vector<8xf32>
    %2 = vector.shape_cast %1 : vector<8xf32> to vector<8x1xf32>
    %cst_1 = arith.constant 3.125000e-02 : f32
    %3 = vector.broadcast %cst_1 : f32 to vector<8x1xf32>
    %4 = arith.mulf %2, %3 : vector<8x1xf32>
    %5 = vector.broadcast %4 : vector<8x1xf32> to vector<8x32xf32>
    %6 = arith.subf %0, %5 : vector<8x32xf32>
    %7 = arith.mulf %6, %6 : vector<8x32xf32>
    %cst_2 = arith.constant dense<0.000000e+00> : vector<8xf32>
    %8 = vector.multi_reduction <add>, %7, %cst_2 [1] : vector<8x32xf32> to vector<8xf32>
    %9 = vector.shape_cast %8 : vector<8xf32> to vector<8x1xf32>
    %cst_3 = arith.constant 3.125000e-02 : f32
    %10 = vector.broadcast %cst_3 : f32 to vector<8x1xf32>
    %11 = arith.mulf %9, %10 : vector<8x1xf32>
    %cst_4 = arith.constant 9.99999997E-7 : f32
    %12 = vector.broadcast %cst_4 : f32 to vector<8x1xf32>
    %13 = arith.addf %11, %12 : vector<8x1xf32>
    %14 = math.rsqrt %13 : vector<8x1xf32>
    %15 = vector.broadcast %14 : vector<8x1xf32> to vector<8x32xf32>
    %16 = arith.mulf %6, %15 : vector<8x32xf32>
    %c0_5 = arith.constant 0 : index
    %c0_6 = arith.constant 0 : index
    %17 = vector.load %arg2[%c0_5, %c0_6] : memref<4x32xf32, #tpu.memory_space<vmem>>, vector<4x32xf32>
    %18 = tpu.iota {dimensions = array<i32: 0>} : vector<8x1xi32>
    %c8_i32 = arith.constant 8 : i32
    %c0_i32 = arith.constant 0 : i32
    %19 = arith.cmpi eq, %c8_i32, %c0_i32 : i32
    %c1_i32 = arith.constant 1 : i32
    %20 = arith.select %19, %c1_i32, %c8_i32 : i32
    %21 = vector.broadcast %20 : i32 to vector<8x1xi32>
    %22 = arith.remsi %18, %21 : vector<8x1xi32>
    %c0_i32_7 = arith.constant 0 : i32
    %23 = vector.broadcast %c0_i32_7 : i32 to vector<8x1xi32>
    %24 = arith.cmpi ne, %22, %23 : vector<8x1xi32>
    %c0_i32_8 = arith.constant 0 : i32
    %25 = vector.broadcast %c0_i32_8 : i32 to vector<8x1xi32>
    %26 = arith.cmpi slt, %22, %25 : vector<8x1xi32>
    %c0_i32_9 = arith.constant 0 : i32
    %27 = arith.cmpi slt, %20, %c0_i32_9 : i32
    %28 = vector.broadcast %27 : i1 to vector<8x1xi1>
    %29 = vector.broadcast %28 : vector<8x1xi1> to vector<8x1xi1>
    %30 = arith.xori %26, %29 : vector<8x1xi1>
    %31 = arith.andi %30, %24 : vector<8x1xi1>
    %32 = vector.broadcast %20 : i32 to vector<8x1xi32>
    %33 = arith.addi %22, %32 : vector<8x1xi32>
    %34 = arith.select %31, %33, %22 : vector<8x1xi1>, vector<8x1xi32>
    %c0_i32_10 = arith.constant 0 : i32
    %35 = vector.broadcast %c0_i32_10 : i32 to vector<8x1xi32>
    %36 = arith.cmpi eq, %34, %35 : vector<8x1xi32>
    %c1_i32_11 = arith.constant 1 : i32
    %37 = tpu.dynamic_rotate %16 by %c1_i32_11 dim 0 : vector<8x32xf32>, i32 -> vector<8x32xf32>
    %cst_12 = arith.constant 0.000000e+00 : f32
    %38 = vector.shape_cast %36 : vector<8x1xi1> to vector<8x1xi1>
    %39 = vector.broadcast %38 : vector<8x1xi1> to vector<8x32xi1>
    %40 = vector.broadcast %cst_12 : f32 to vector<8x32xf32>
    %41 = arith.select %39, %40, %37 : vector<8x32xi1>, vector<8x32xf32>
    %c7_i32 = arith.constant 7 : i32
    %42 = vector.broadcast %c7_i32 : i32 to vector<8x1xi32>
    %43 = arith.cmpi eq, %34, %42 : vector<8x1xi32>
    %c7_i32_13 = arith.constant 7 : i32
    %44 = tpu.dynamic_rotate %16 by %c7_i32_13 dim 0 : vector<8x32xf32>, i32 -> vector<8x32xf32>
    %cst_14 = arith.constant 0.000000e+00 : f32
    %45 = vector.shape_cast %43 : vector<8x1xi1> to vector<8x1xi1>
    %46 = vector.broadcast %45 : vector<8x1xi1> to vector<8x32xi1>
    %47 = vector.broadcast %cst_14 : f32 to vector<8x32xf32>
    %48 = arith.select %46, %47, %44 : vector<8x32xi1>, vector<8x32xf32>
    %49 = vector.extract_strided_slice %17 {offsets = [0, 0], sizes = [1, 32], strides = [1, 1]} : vector<4x32xf32> to vector<1x32xf32>
    %50 = vector.broadcast %49 : vector<1x32xf32> to vector<8x32xf32>
    %51 = arith.mulf %41, %50 : vector<8x32xf32>
    %52 = vector.extract_strided_slice %17 {offsets = [1, 0], sizes = [1, 32], strides = [1, 1]} : vector<4x32xf32> to vector<1x32xf32>
    %53 = vector.broadcast %52 : vector<1x32xf32> to vector<8x32xf32>
    %54 = arith.mulf %16, %53 : vector<8x32xf32>
    %55 = arith.addf %51, %54 : vector<8x32xf32>
    %56 = vector.extract_strided_slice %17 {offsets = [2, 0], sizes = [1, 32], strides = [1, 1]} : vector<4x32xf32> to vector<1x32xf32>
    %57 = vector.broadcast %56 : vector<1x32xf32> to vector<8x32xf32>
    %58 = arith.mulf %48, %57 : vector<8x32xf32>
    %59 = arith.addf %55, %58 : vector<8x32xf32>
    %60 = vector.extract_strided_slice %17 {offsets = [3, 0], sizes = [1, 32], strides = [1, 1]} : vector<4x32xf32> to vector<1x32xf32>
    %61 = vector.broadcast %60 : vector<1x32xf32> to vector<8x32xf32>
    %62 = arith.addf %59, %61 : vector<8x32xf32>
    %c0_15 = arith.constant 0 : index
    %c0_16 = arith.constant 0 : index
    %63 = vector.load %arg3[%c0_15, %c0_16] : memref<32x16xf32, #tpu.memory_space<vmem>>, vector<32x16xf32>
    %cst_17 = arith.constant dense<0.000000e+00> : vector<8x16xf32>
    %64 = tpu.matmul %62, %63, %cst_17 {dimension_numbers = #tpu.dot_dimension_numbers<[1], [0], [0], [1], [0, 0, 1, 1], [], []>} : vector<8x32xf32>, vector<32x16xf32>, vector<8x16xf32> -> vector<8x16xf32>
    %c0_18 = arith.constant 0 : index
    %c0_19 = arith.constant 0 : index
    %65 = vector.load %arg4[%c0_18, %c0_19] : memref<1x16xf32, #tpu.memory_space<vmem>>, vector<1x16xf32>
    %66 = vector.broadcast %65 : vector<1x16xf32> to vector<8x16xf32>
    %67 = arith.addf %64, %66 : vector<8x16xf32>
    %c0_20 = arith.constant 0 : index
    %c0_21 = arith.constant 0 : index
    %68 = vector.load %arg5[%c0_20, %c0_21] : memref<8x16xf32, #tpu.memory_space<vmem>>, vector<8x16xf32>
    tpu.vector_store %arg5[%c0_20, %c0_21], %67 {strides = array<i32>} : memref<8x16xf32, #tpu.memory_space<vmem>>, vector<8x16xf32>,
    return
  }
  func.func @transform_0(%arg0: i32) -> (i32, i32) {
    %c0_i32 = arith.constant 0 : i32
    %c0_i32_0 = arith.constant 0 : i32
    return %arg0, %c0_i32 : i32, i32
  }
  func.func @transform_1(%arg0: i32) -> (i32, i32) {
    %c0_i32 = arith.constant 0 : i32
    %c0_i32_0 = arith.constant 0 : i32
    %c0_i32_1 = arith.constant 0 : i32
    return %c0_i32, %c0_i32_0 : i32, i32
  }
  func.func @transform_2(%arg0: i32) -> (i32, i32) {
    %c0_i32 = arith.constant 0 : i32
    %c0_i32_0 = arith.constant 0 : i32
    %c0_i32_1 = arith.constant 0 : i32
    return %c0_i32, %c0_i32_0 : i32, i32
  }
  func.func @transform_3(%arg0: i32) -> (i32, i32) {
    %c0_i32 = arith.constant 0 : i32
    %c0_i32_0 = arith.constant 0 : i32
    %c0_i32_1 = arith.constant 0 : i32
    return %c0_i32, %c0_i32_0 : i32, i32
  }
  func.func @transform_4(%arg0: i32) -> (i32, i32) {
    %c0_i32 = arith.constant 0 : i32
    %c0_i32_0 = arith.constant 0 : i32
    return %arg0, %c0_i32 : i32, i32
  }
}

</mosaic_0001>

<bundles_post_ra>
// kernel: tpu_custom_call.1
= control target key start
LH: loop header
LB: loop body
LE: loop exit
PB: predicated region body
PF: predicated region fallthrough
CT: control target
= control target key end

     0   :  { %9 = vsyncpa [#allocation3], 0  ;;  %s608_s0 = inlined_call_operand.vmem [shape: f32[16,32], index: 0, kind: input, shape index: {}]   ;;  %s609_s1 = inlined_call_operand.vmem [shape: f32[4,32], index: 1, kind: input, shape index: {}]   ;;  %s610_s2 = inlined_call_operand.vmem [shape: f32[32,16], index: 2, kind: input, shape index: {}]   ;;  %s611_s3 = inlined_call_operand.vmem [shape: f32[1,16], index: 3, kind: input, shape index: {}]   ;;  %s612_s4 = inlined_call_operand.hbm [shape: f32[16,16], index: 4, kind: output, shape index: {}]  }
   0x1   :  { %11 = vsyncpa [#allocation3 + $0x1], 0  ;;  %s502_s15 = smov 0   ;;  %s504_s16 = smov 0  }
   0x2   :  { %s506_s17 = smov 0   ;;  %s508_s18 = smov 0  }
   0x3 LB: > { %s523_s19 = sadd.s32 4294967295, %s475_s18   ;;  %s360_s20 = sadd.s32 4294967294, %s475_s18   ;;  %s475_s18 = sphi %s508_s18, %s618_s18   ;;  %s471_s17 = sphi %s506_s17, %s617_s17   ;;  %s467_s16 = sphi %s504_s16, %s616_s16   ;;  %s463_s15 = sphi %s502_s15, %s615_s15  }
   0x4   : > { %s527_s21 = sadd.s32 1, %s475_s18   ;;  %s113_s22 = sadd.s32 1, %s471_s17 }
   0x5   : > { %s110_s23 = ssub.s32 %s475_s18, %s527_s21  ;;  %p123_p0 = scmp.ne.s32.totalorder %s471_s17, %s467_s16 }
   0x6   : > { %p111_p1 = scmp.eq.s32.totalorder %s110_s23, 0  ;;  %p124_p2 = scmp.eq.s32.totalorder %s523_s19, 1 }
   0x7   : > { %p129_p3 = scmp.ne.s32.totalorder %s467_s16, %s463_s15  ;;  %p130_p4 = scmp.eq.s32.totalorder %s360_s20, 1 }
   0x8   : > { %s538_s24 = scalar_select %p111_p1, %s471_s17, %s113_s22  }
   0x9   : > { %p540_p5 = por %p124_p2, %p123_p0  ;;  %p544_p6 = por %p130_p4, %p129_p3 }
   0xa   : > { %p363_p7 = scmp.ge.s32.totalorder %s475_s18, 1  ;;  %p164_p8 = scmp.lt.s32.totalorder %s475_s18, 3 }
   0xc   : > { %p165_p9 = pnand %p363_p7, %p164_p8 }
   0xd   : > { %p189_p10 = scmp.lt.s32.totalorder (!%p165_p9), %s523_s19, 1  ;;  %s186_s22 = sand.u32 (!%p165_p9), 1, %s467_s16  }
   0xe   : > { %168 = sbr.rel (%p165_p9) target bundleno = 430 (0x1ae), region = 36  ;;  %s364_s23 = sshll.u32 (!%p165_p9), %s186_s22, 3 }
   0xf   : > { %s188_s7 = scalar_lea.vmem (!%p165_p9), [#allocation2], %s364_s23  ;;  %s286_s10 = scalar_lea.sflag (!%p165_p9), [#allocation3], %s186_s22 }
  0x10   : > { %s298_s8 = sshll.u32 (!%p165_p9), %s188_s7, 4  ;;  %s433_s14 = scalar_lea.hbm (!%p165_p9), %s612_s4, 16  ;;  %s299_s8 = int_to_ptr.vmem [resolvable:$true] %s298_s8 }
  0x13   : > { %s190_s27 = scalar_select %p189_p10, %s523_s19, 1  ;;  %vm194_vm0 = vcmask 261120   ;;  %v255_v7 = vld [vmem:[%s610_s2 + $0x18] sm:$0xff]  ;;  %v254_v8 = vld [vmem:[%s610_s2 + $0x10] sm:$0xff]  ;;  %v253_v9 = vld [vmem:[%s610_s2 + $0x8] sm:$0xff]  ;;  %v218_v16 = vlaneseq  ;;  %vm283_vm6 = vcmask 130048  }
  0x14   : > { %275 = vmatpush.msra.mxu0 %v255_v7  ;;  %v252_v10 = vld [vmem:[%s610_s2] sm:$0xff] }
  0x15   : > { %s365_s28 = sshll.u32 %s190_s27, 3  ;;  %v219_v19 = vshrl.u32 %v218_v16, 7  ;;  %v217_v23 = vld [vmem:[%s609_s1] sm:$0xf]  ;;  %s368_s27 = sshll.u32 %s523_s19, 3 }
  0x16   : > { %s192_s5 = scalar_lea.vmem %s608_s0, %s365_s28  ;;  %276 = vmatpush.msra.mxu0 %v254_v8  ;;  %v242_v26 = vperm.slane %v217_v23, 0  ;;  %v244_v27 = vperm.slane %v217_v23, 1  ;;  %v247_v30 = vperm.slane %v217_v23, 2  ;;  %v250_v37 = vperm.slane %v217_v23, 3  ;;  %s296_s30 = scalar_lea.hbm %s612_s4, %s368_s27  ;;  %v410_v40 = vld [vmem:[%s611_s3] ss:$0 sm:$0xff] }
  0x17   : > { %v193_v0 = vld [vmem:[%s192_s5] sm:$0xff]  ;;  %v224_v22 = vand.u32 7, %v219_v19  ;;  %s300_s9 = sshll.u32 %s296_s30, 4  ;;  %s301_s9 = int_to_ptr.hbm [resolvable:$true] %s300_s9 }
  0x18   : > { %v195_v1 = vsel %vm194_vm0, %v193_v0, 0.0  ;;  %277 = vmatpush.msra.mxu0 %v253_v9  ;;  %s427_s19 = sshra.s32 %s301_s9, 4  ;;  %s428_s19 = int_to_ptr.hbm [resolvable:$true] %s427_s19 }
  0x19   : > { %196 = vadd.xlane.f32.xlu0 %v195_v1  ;;  %vm232_vm4 = vcmp.eq.s32.totalorder %v224_v22, 0  ;;  %vm237_vm5 = vcmp.eq.s32.totalorder %v224_v22, 7  ;;  %s429_s11 = scalar_lea.hbm %s428_s19, 8  ;;  %p434_p0 = scmp.lt.s32.totalorder %s428_s19, %s612_s4 }
  0x1a   : > { %278 = vmatpush.msra.mxu0 %v252_v10  ;;  %p430_p11 = scmp.ne.s32.totalorder %s428_s19, %s429_s11  ;;  %p435_p1 = scmp.lt.s32.totalorder %s433_s14, %s429_s11 }
  0x1c   : > { %p431_p12 = pnand %p430_p11, %p540_p5  ;;  %p436_p2 = por %p435_p1, %p434_p0 }
  0x1e   : > { %p432_p13 = pneg %p431_p12 }
  0x20   : > { %p437_p3 = pnand %p436_p2, %p432_p13 }
  0x8c   : > { %v197_v2 = vpop.xlane.xlu0 %196 }
  0x8d   : > { %v198_v3 = vmul.f32 0.03125, %v197_v2 }
  0x8f   : > { %v199_v4 = vsub.f32 %v193_v0, %v198_v3 }
  0x91   : > { %v200_v5 = vmul.f32 %v199_v4, %v199_v4 }
  0x93   : > { %v201_v6 = vsel %vm194_vm0, %v200_v5, 0.0 }
  0x94   : > { %202 = vadd.xlane.f32.xlu0 %v201_v6 }
 0x107   : > { %v203_v11 = vpop.xlane.xlu0 %202 }
 0x108   : > { %v204_v12 = vmul.f32 0.03125, %v203_v11 }
 0x10a   : > { %v205_v13 = vadd.f32 1e-06, %v204_v12 }
 0x10c   : > { %411 = vrsqrt.f32 %v205_v13  ;;  %vm212_vm2 = vweird.f32 %v205_v13 }
 0x112   : > { %v412_v14 = vpop.eup %411 }
 0x113   : > { %v207_v15 = vmul.f32 %v412_v14, %v205_v13  ;;  %vm213_vm1 = vweird.f32 %v412_v14 }
 0x114   : > { %vm214_vm3 = vmor %vm212_vm2, %vm213_vm1 }
 0x115   : > { %v208_v17 = vmul.f32 %v412_v14, %v207_v15 }
 0x117   : > { %v209_v18 = vmul.f32 0.5, %v208_v17 }
 0x119   : > { %v210_v20 = vsub.f32 1.5, %v209_v18 }
 0x11b   : > { %v211_v21 = vmul.f32 %v412_v14, %v210_v20 }
 0x11d   : > { %v215_v24 = vsel %vm214_vm3, %v412_v14, %v211_v21 }
 0x11e   : > { %v216_v25 = vmul.f32 %v215_v24, %v199_v4 }
 0x120   : > { %v233_v28 = vrot.slane %v216_v25, 7  ;;  %v238_v29 = vrot.slane %v216_v25, 1  ;;  %v245_v34 = vmul.f32 %v244_v27, %v216_v25 }
 0x122   : > { %v236_v31 = vsel %vm232_vm4, 0.0, %v233_v28  ;;  %v241_v32 = vsel %vm237_vm5, 0.0, %v238_v29 }
 0x123   : > { %v243_v33 = vmul.f32 %v242_v26, %v236_v31  ;;  %v248_v36 = vmul.f32 %v247_v30, %v241_v32 }
 0x125   : > { %v246_v35 = vadd.f32 %v245_v34, %v243_v33 }
 0x127   : > { %v249_v38 = vadd.f32 %v248_v36, %v246_v35 }
 0x129   : > { %v251_v39 = vadd.f32 %v250_v37, %v249_v38 }
 0x12b   : > { %366 = vmatmul.msk.f32.vlgmr.msra.gmra.mxu0 %vm194_vm0, %v251_v39 }
 0x1a8   : > { %v280_v41 = vpop.f32.mrf.mxu0 }
 0x1a9   : > { %v281_v42 = vadd.f32 %v410_v40, %v280_v41 }
 0x1ab   : > { %284 = vst.msk [vmem:[%s188_s7] sm:$0xff] %vm283_vm6, %v281_v42 }
 0x1ac   : > { %440 = shalt.err (!%p437_p3)
}
 0x1ad   : > { %371 = dma.vmem_to_hbm [thread:$0]  (%p540_p5), %s299_s8, 128, %s301_s9, %s286_s10  }
 0x1ae PF: > { %p377_p4 = scmp.ge.s32.totalorder %s475_s18, 2  ;;  %s312_s22 = sand.u32 1, %s463_s15  }
 0x1af   : > { %s313_s27 = scalar_lea.sflag [#allocation3], %s312_s22 }
 0x1b0   : > { %p374_p7 = pnand %p377_p4, %p544_p6 }
 0x1b2   : > { %p375_p8 = pneg %p374_p7 }
 0x1b4   : > { %458 = dma.done.wait (%p375_p8), %s313_s27, 128  }
 0x1b5   : > { %460 = vsyncadd (%p375_p8), %s313_s27, 4294967168  ;;  %p14_p9 = scmp.ge.s32.totalorder %s527_s21, 4   ;;  %s615_s15 = smov %s467_s16 }
 0x1b6   : > { %s616_s16 = smov %s471_s17  ;;  %s617_s17 = smov %s538_s24 }
 0x1b7   : > { %s618_s18 = smov %s527_s21  ;;  %16 = sbr.rel (!%p14_p9) target bundleno = 3 (0x3), region = 71 }
 0x1bc   :  { %319 = vsyncpa [#allocation3], 1 }
 0x1bd   :  { %321 = vsyncpa [#allocation3 + $0x1], 1 }

</bundles_post_ra>
